<compile_context>
chip_gen: v6e
topology: v6e:2x2x1
jax: 0.10.0
libtpu: 0.0.40
codegen_flags: <defaults>
</compile_context>

<pallas_src>
import functools
import warnings

import jax
import jax.numpy as jnp
from jax.experimental import pallas as pl
from jax.experimental.pallas import tpu as pltpu


def _subs_kernel(zt_ref, logits_ref, out_ref, *, mask_token_id: int, v_tile: int):
    # zt_ref:     (TR, 1)       int32
    # logits_ref: (TR, v_tile)  logits dtype
    # out_ref:    (TR, v_tile)  logits dtype
    dt = out_ref.dtype
    j = pl.program_id(1)                    # vocab-block index
    base = j * v_tile                       # element offset of this vocab tile

    zt = zt_ref[...]                        # (TR, 1) int32
    is_masked = zt == mask_token_id         # (TR, 1) bool

    # Narrow (column) precompute: which vocab id gets the "hi" value and what
    # that value is. The block base is folded in here so the wide iota below
    # is compared raw (no full-width add).
    target_local = jnp.where(is_masked, jnp.int32(mask_token_id), zt) - base   # (TR, 1)
    hi = jnp.where(is_masked, jnp.array(-jnp.inf, dt), jnp.array(1e9, dt))     # (TR, 1)

    logits = logits_ref[...]                # (TR, v_tile)
    lane = jax.lax.broadcasted_iota(jnp.int32, logits.shape, dimension=1)

    # Masked rows keep their logits elsewhere; unmasked rows are 0 elsewhere.
    keep = jnp.where(is_masked, logits, jnp.array(0.0, dt))
    out_ref[...] = jnp.where(lane == target_local, hi, keep)


def _round_up(x: int, m: int) -> int:
    return (x + m - 1) // m * m


def subs_parameterization(logits: jax.Array, z_t: jax.Array,
                          vocab_size: int, mask_token_id: int,
                          *,
                          target_block_bytes: int = 8 * 1024 * 1024,
                          max_row_tile: int = 4096,
                          vmem_limit_bytes: int = 48 * 1024 * 1024) -> jax.Array:
    """Apply SUBS parameterization.

    Args:
      logits: (B, S, V) float32 or bfloat16
      z_t:    (B, S)    integer tokens
    Returns:
      (B, S, V) same dtype as logits

    For best performance, the caller should donate `logits` (e.g.
    jax.jit(..., donate_argnums=...)) so the output aliases its HBM buffer.
    """
    B, S, V = logits.shape
    assert V == vocab_size
    rows = B * S
    dtype = logits.dtype
    itemsize = jnp.dtype(dtype).itemsize
    # Sublane multiple for this dtype (f32 -> 8, bf16 -> 16, int8/fp8 -> 32).
    sub = 8 * max(1, 4 // itemsize)

    # ---- vocab (lane) tiling: prefer one full-vocab tile (contiguous DMAs) ----
    v_full = _round_up(V, 128)
    if sub * v_full * itemsize <= target_block_bytes:
        v_tile = v_full
    else:
        v_tile = max(128, (target_block_bytes // (sub * itemsize)) // 128 * 128)

    # ---- row tile sized so each logits/out block is ~target_block_bytes ----
    rt = target_block_bytes // (v_tile * itemsize)
    rt = max(sub, min(max_row_tile, (rt // sub) * sub))
    rt = min(rt, _round_up(rows, sub))      # don't over-size tiny inputs

    logits2d = logits.reshape(rows, V)
    zt2d = z_t.astype(jnp.int32).reshape(rows, 1)

    grid = (pl.cdiv(rows, rt), pl.cdiv(V, v_tile))
    kernel = functools.partial(_subs_kernel, mask_token_id=mask_token_id,
                               v_tile=v_tile)

    out2d = pl.pallas_call(
        kernel,
        out_shape=jax.ShapeDtypeStruct((rows, V), dtype),
        grid_spec=pltpu.PrefetchScalarGridSpec(
            num_scalar_prefetch=0,
            grid=grid,
            in_specs=[
                # z_t block: independent of the vocab axis -> loaded once per row tile.
                pl.BlockSpec((rt, 1), lambda i, j: (i, 0)),
                pl.BlockSpec((rt, v_tile), lambda i, j: (i, j)),
            ],
            out_specs=pl.BlockSpec((rt, v_tile), lambda i, j: (i, j)),
        ),
        # The op logically overwrites logits: reuse its HBM buffer for the output.
        input_output_aliases={1: 0},
        compiler_params=pltpu.CompilerParams(
            # No cross-block accumulation on either axis -> both parallel
            # (lets v7x's two TensorCores split decode-like shapes too).
            dimension_semantics=("parallel", "parallel"),
            vmem_limit_bytes=vmem_limit_bytes,
        ),
        cost_estimate=pl.CostEstimate(
            flops=5 * rows * V,
            transcendentals=0,
            bytes_accessed=2 * rows * V * itemsize + rows * 4,
        ),
    )(zt2d, logits2d)

    return out2d.reshape(B, S, V)


def _reference(logits, z_t, vocab_size, mask_token_id):
    # pure-JAX reference mirroring the PyTorch forward (computed in f32)
    logits = logits.astype(jnp.float32)
    logits = logits.at[:, :, mask_token_id].set(-jnp.inf)
    not_masked = z_t != mask_token_id
    one_hot = jax.nn.one_hot(z_t, vocab_size, dtype=jnp.float32) * 1e9
    return jnp.where(not_masked[..., None], one_hot, logits)


if __name__ == "__main__":
    # Donation is honored via input_output_aliases; silence the (harmless)
    # warning if XLA ever declines to reuse a donated buffer.
    warnings.filterwarnings("ignore", message="Some donated buffers were not usable")

    B, S, V = 2, 8, 32
    mask_token_id = V - 1

    key = jax.random.PRNGKey(0)
    k1, k2 = jax.random.split(key)
    logits = jax.random.normal(k1, (B, S, V), dtype=jnp.float32)
    # random tokens; force a few positions to be the mask token
    z_t = jax.random.randint(k2, (B, S), 0, V - 1, dtype=jnp.int32)
    z_t = z_t.at[0, 0].set(mask_token_id).at[1, 3].set(mask_token_id)

    fwd = jax.jit(
        functools.partial(subs_parameterization, vocab_size=V,
                          mask_token_id=mask_token_id),
        donate_argnums=(0,),
    )

    # ---- f32 path ----
    ref = _reference(logits, z_t, V, mask_token_id)
    logits_bf = logits.astype(jnp.bfloat16)          # copy before donation
    out = jax.block_until_ready(fwd(logits, z_t))    # logits donated here
    assert out.shape == (B, S, V) and out.dtype == jnp.float32
    ok = jnp.where(jnp.isneginf(ref), jnp.isneginf(out), jnp.abs(out - ref) < 1e-5)
    assert bool(jnp.all(ok))

    # ---- bf16 path (native dtype, no wrapper cast) ----
    ref_bf = _reference(logits_bf, z_t, V, mask_token_id)
    out_bf = jax.block_until_ready(fwd(logits_bf, z_t)).astype(jnp.float32)
    tol = 1e-2 * jnp.maximum(jnp.abs(ref_bf), 1.0)
    ok_bf = jnp.where(jnp.isneginf(ref_bf), jnp.isneginf(out_bf),
                      jnp.abs(out_bf - ref_bf) <= tol)
    assert out_bf.shape == (B, S, V)
    assert bool(jnp.all(ok_bf))

    print("KERNEL_OK")
</pallas_src>

<mosaic_0001>
module attributes {stable_mosaic.version = 11 : i64} {
  func.func @_subs_kernel(%arg0: i32, %arg1: i32, %arg2: memref<16x1xi32, #tpu.memory_space<vmem>>, %arg3: memref<16x128xf32, #tpu.memory_space<vmem>>, %arg4: memref<16x128xf32, #tpu.memory_space<vmem>>) attributes {dimension_semantics = [#tpu.dimension_semantics<parallel>, #tpu.dimension_semantics<parallel>], iteration_bounds = array<i64: 1, 1>, scalar_prefetch = 0 : i64, scratch_operands = 0 : i64, tpu.core_type = #tpu.core_type<tc>, window_params = [{transform_indices = @transform_0, window_bounds = array<i64: 16, 1>}, {transform_indices = @transform_1, window_bounds = array<i64: 16, 128>}, {transform_indices = @transform_2, window_bounds = array<i64: 16, 128>}]} {
    %c128_i32 = arith.constant 128 : i32
    %0 = arith.muli %arg1, %c128_i32 : i32
    %c0 = arith.constant 0 : index
    %c0_0 = arith.constant 0 : index
    %1 = vector.load %arg2[%c0, %c0_0] : memref<16x1xi32, #tpu.memory_space<vmem>>, vector<16x1xi32>
    %c31_i32 = arith.constant 31 : i32
    %2 = vector.broadcast %c31_i32 : i32 to vector<16x1xi32>
    %3 = arith.cmpi eq, %1, %2 : vector<16x1xi32>
    %c31_i32_1 = arith.constant 31 : i32
    %4 = vector.broadcast %c31_i32_1 : i32 to vector<16x1xi32>
    %5 = arith.select %3, %4, %1 : vector<16x1xi1>, vector<16x1xi32>
    %6 = vector.broadcast %0 : i32 to vector<16x1xi32>
    %7 = arith.subi %5, %6 : vector<16x1xi32>
    %cst = arith.constant 0xFF800000 : f32
    %cst_2 = arith.constant 1.000000e+09 : f32
    %8 = vector.broadcast %cst : f32 to vector<16x1xf32>
    %9 = vector.broadcast %cst_2 : f32 to vector<16x1xf32>
    %10 = arith.select %3, %8, %9 : vector<16x1xi1>, vector<16x1xf32>
    %c0_3 = arith.constant 0 : index
    %c0_4 = arith.constant 0 : index
    %11 = vector.load %arg3[%c0_3, %c0_4] : memref<16x128xf32, #tpu.memory_space<vmem>>, vector<16x128xf32>
    %12 = tpu.iota {dimensions = array<i32: 1>} : vector<16x128xi32>
    %cst_5 = arith.constant 0.000000e+00 : f32
    %13 = vector.shape_cast %3 : vector<16x1xi1> to vector<16x1xi1>
    %14 = vector.broadcast %13 : vector<16x1xi1> to vector<16x128xi1>
    %15 = vector.broadcast %cst_5 : f32 to vector<16x128xf32>
    %16 = arith.select %14, %11, %15 : vector<16x128xi1>, vector<16x128xf32>
    %17 = vector.broadcast %7 : vector<16x1xi32> to vector<16x128xi32>
    %18 = arith.cmpi eq, %12, %17 : vector<16x128xi32>
    %19 = vector.shape_cast %10 : vector<16x1xf32> to vector<16x1xf32>
    %20 = vector.broadcast %19 : vector<16x1xf32> to vector<16x128xf32>
    %21 = arith.select %18, %20, %16 : vector<16x128xi1>, vector<16x128xf32>
    %c0_6 = arith.constant 0 : index
    %c0_7 = arith.constant 0 : index
    %22 = vector.load %arg4[%c0_6, %c0_7] : memref<16x128xf32, #tpu.memory_space<vmem>>, vector<16x128xf32>
    tpu.vector_store %arg4[%c0_6, %c0_7], %21 {strides = array<i32>} : memref<16x128xf32, #tpu.memory_space<vmem>>, vector<16x128xf32>,
    return
  }
  func.func @transform_0(%arg0: i32, %arg1: i32) -> (i32, i32) {
    %c0_i32 = arith.constant 0 : i32
    %c0_i32_0 = arith.constant 0 : i32
    return %arg0, %c0_i32 : i32, i32
  }
  func.func @transform_1(%arg0: i32, %arg1: i32) -> (i32, i32) {
    %c0_i32 = arith.constant 0 : i32
    return %arg0, %arg1 : i32, i32
  }
  func.func @transform_2(%arg0: i32, %arg1: i32) -> (i32, i32) {
    %c0_i32 = arith.constant 0 : i32
    return %arg0, %arg1 : i32, i32
  }
}

</mosaic_0001>

<bundles_post_ra>
// kernel: subs_parameterization.1
= control target key start
LH: loop header
LB: loop body
LE: loop exit
PB: predicated region body
PF: predicated region fallthrough
CT: control target
= control target key end

     0   :  { %v67_v0 = vmov 0   ;;  %v68_v5 = vmov 1e+09   ;;  %v23_v9 = vlaneseq  ;;  %s102_s0 = inlined_call_operand.vmem [shape: s32[16,1], index: 0, kind: input, shape index: {}]   ;;  %s103_s1 = inlined_call_operand.vmem [shape: f32[16,32], index: 1, kind: input, shape index: {}, may-alias: {1,2}]   ;;  %s104_s2 = inlined_call_operand.vmem [shape: f32[16,32], index: 2, kind: output, shape index: {}, may-alias: {1,2}]  }
   0x1   :  { %65 = vset.pattern.permute.xlu1 %v67_v0  ;;  %v12_v1 = vld [vmem:[%s102_s0] sm:$0xff]  ;;  %66 = vset.pattern.permute.xlu0 %v67_v0  ;;  %v13_v2 = vld [vmem:[%s102_s0 + $0x8] sm:$0xff] }
   0x2   :  { %38 = vperm.xlu1 %65, %v12_v1   ;;  %vm14_vm0 = vcmp.eq.s32.totalorder %v12_v1, 31  ;;  %vm15_vm1 = vcmp.eq.s32.totalorder %v13_v2, 31  ;;  %v22_v12 = vld [vmem:[%s103_s1 + $0x8] sm:$0xff]  ;;  %v24_v13 = vand.u32 127, %v23_v9  ;;  %v21_v15 = vld [vmem:[%s103_s1] sm:$0xff] }
   0x3   :  { %v25_v3 = vsel %vm14_vm0, 1, %v67_v0  ;;  %v26_v4 = vsel %vm15_vm1, 1, %v67_v0  ;;  %v20_v6 = vsel %vm15_vm1, -inf, %v68_v5  ;;  %v19_v7 = vsel %vm14_vm0, -inf, %v68_v5 }
   0x4   :  { %28 = vperm.xlu0 %66, %v25_v3  }
   0x6   :  { %41 = vperm.xlu1 %65, %v13_v2  }
   0x8   :  { %31 = vperm.xlu0 %66, %v26_v4  }
   0xa   :  { %52 = vperm.xlu1 %65, %v20_v6  }
   0xc   :  { %47 = vperm.xlu0 %66, %v19_v7  }
  0x7d   :  { %v39_v8 = vpop.permute.xlu1 %38 }
  0x7e   :  { %vm43_vm5 = vcmp.eq.s32.totalorder %v24_v13, %v39_v8 }
  0x7f   :  { %v29_v10 = vpop.permute.xlu0 %28 }
  0x80   :  { %vm33_vm2 = vcmp.eq.s32.totalorder %v29_v10, 1 }
  0x81   :  { %v42_v11 = vpop.permute.xlu1 %41  ;;  %v35_v19 = vsel %vm33_vm2, %v21_v15, 0.0 }
  0x82   :  { %vm44_vm4 = vcmp.eq.s32.totalorder %v24_v13, %v42_v11 }
  0x83   :  { %v32_v14 = vpop.permute.xlu0 %31 }
  0x84   :  { %vm34_vm3 = vcmp.eq.s32.totalorder %v32_v14, 1 }
  0x85   :  { %v36_v16 = vsel %vm34_vm3, %v22_v12, 0.0  ;;  %v53_v17 = vpop.permute.xlu1 %52 }
  0x86   :  { %v56_v18 = vsel %vm44_vm4, %v53_v17, %v36_v16 }
  0x87   :  { %58 = vst [vmem:[%s104_s2 + $0x8] sm:$0xff] %v56_v18  ;;  %v48_v20 = vpop.permute.xlu0 %47 }
  0x88   :  { %v55_v21 = vsel %vm43_vm5, %v48_v20, %v35_v19 }
  0x89   :  { %57 = vst [vmem:[%s104_s2] sm:$0xff] %v55_v21 }

</bundles_post_ra>
